<compile_context>
chip_gen: v7x
topology: tpu7x:2x2x1
jax: 0.10.0
libtpu: 0.0.40
codegen_flags: <defaults>
</compile_context>

<pallas_src>
import functools
import math

import numpy as np

import jax
import jax.numpy as jnp
from jax.experimental import pallas as pl
from jax.experimental.pallas import tpu as pltpu


def _adaptive_avg_matrix(in_size: int, out_size: int) -> jnp.ndarray:
    """(out_size, in_size) adaptive-average weights; row o averages its bin.

    Bin edges via exact integer arithmetic: start = (o*in)//out,
    end = ceil((o+1)*in/out), matching PyTorch's adaptive_avg_pool2d.
    """
    o = np.arange(out_size, dtype=np.int64)[:, None]
    j = np.arange(in_size, dtype=np.int64)[None, :]
    start = (o * in_size) // out_size
    end = ((o + 1) * in_size + out_size - 1) // out_size
    w = np.where((j >= start) & (j < end), 1.0 / (end - start), 0.0)
    return jnp.asarray(w, dtype=jnp.float32)


def _pick_block_planes(nb: int, plane_in_elems: int, plane_out_elems: int,
                       itemsize: int = 4,
                       budget_bytes: int = 8 * 1024 * 1024) -> int:
    """Largest divisor of nb whose double-buffered in+out blocks fit the budget.

    Non-full blocks keep the plane (sublane) dim a multiple of 8 so the output
    BlockSpec satisfies the (8, 128) tiling constraint.
    """
    cands = [d for d in range(1, nb + 1)
             if nb % d == 0 and (d == nb or d % 8 == 0)]
    per_plane = (plane_in_elems + plane_out_elems) * itemsize * 2  # 2x: double buffered
    fitting = [d for d in cands if d * per_plane <= budget_bytes]
    return max(fitting) if fitting else min(cands)


def _area_kernel(ah_ref, aw_ref, x_ref, o_ref):
    # ah_ref: (Ho, Hi)   aw_ref: (Wi, Wo)
    # x_ref : (BP, Hi, Wi) block of planes     o_ref: (BP, Ho, Wo)
    bp, hi, wi = x_ref.shape
    ho = ah_ref.shape[0]
    wo = aw_ref.shape[1]

    # W-pass: fold the plane batch into the matmul M dim -> one large MXU
    # matmul (BP*Hi, Wi) @ (Wi, Wo).  The reshape only merges leading dims
    # (Hi is a multiple of the 8-row sublane tile for these feature maps), so
    # it is a free view, not a relayout.
    x2 = x_ref[...].reshape(bp * hi, wi)
    t = jnp.dot(x2, aw_ref[...], preferred_element_type=jnp.float32)   # (BP*Hi, Wo)

    # H-pass: batched MXU matmul over the BP planes (A_H broadcast across the
    # batch) -- the same batched-dot pattern attention kernels use.
    t3 = t.reshape(bp, hi, wo)
    ah_b = jnp.broadcast_to(ah_ref[...], (bp, ho, hi))
    y = jnp.einsum("boh,bhw->bow", ah_b, t3,
                   preferred_element_type=jnp.float32)                 # (BP, Ho, Wo)

    o_ref[...] = y.astype(o_ref.dtype)


@functools.partial(jax.jit, static_argnames=("scale",))
def area_forward(x: jnp.ndarray, scale) -> jnp.ndarray:
    """x: (N, C, H, W) -> (N, C, floor(H*scale), floor(W*scale)), 'area' mode."""
    N, C, Hi, Wi = x.shape
    Ho = int(math.floor(Hi * float(scale)))
    Wo = int(math.floor(Wi * float(scale)))

    a_h = _adaptive_avg_matrix(Hi, Ho)        # (Ho, Hi)
    a_w = _adaptive_avg_matrix(Wi, Wo).T      # (Wi, Wo)

    nb = N * C
    bp = _pick_block_planes(nb, Hi * Wi, Ho * Wo, x.dtype.itemsize)
    grid = (nb // bp,)

    x3 = x.reshape(nb, Hi, Wi)                # free reshape (contiguous)

    out3 = pl.pallas_call(
        _area_kernel,
        out_shape=jax.ShapeDtypeStruct((nb, Ho, Wo), x.dtype),
        grid_spec=pltpu.PrefetchScalarGridSpec(
            num_scalar_prefetch=0,
            grid=grid,
            in_specs=[
                pl.BlockSpec((Ho, Hi), lambda i: (0, 0)),         # A_H (constant block)
                pl.BlockSpec((Wi, Wo), lambda i: (0, 0)),         # A_W (constant block)
                pl.BlockSpec((bp, Hi, Wi), lambda i: (i, 0, 0)),  # block of planes
            ],
            out_specs=pl.BlockSpec((bp, Ho, Wo), lambda i: (i, 0, 0)),
        ),
        compiler_params=pltpu.CompilerParams(
            # Plane blocks are independent -> shard the grid across TCs (v7x);
            # no-op on single-TC v5e/v6e.
            dimension_semantics=("parallel",),
            # Blocks are sized for <= 8 MiB double-buffered, so 32 MiB keeps us
            # inside v7x's 64 MiB physical / 32 MiB scoped VMEM.
            vmem_limit_bytes=32 * 1024 * 1024,
        ),
    )(a_h, a_w, x3)

    return out3.reshape(N, C, Ho, Wo)         # free reshape (contiguous)


if __name__ == "__main__":
    # Area(stride=2, C_in=4, C_out=4): channels pass through untouched.
    stride = 2
    N, C, H, W = 2, 4, 16, 16

    key = jax.random.PRNGKey(0)
    x = jax.random.normal(key, (N, C, H, W), dtype=jnp.float32)

    out = jax.block_until_ready(area_forward(x, stride))
    Ho, Wo = H * stride, W * stride
    assert out.shape == (N, C, Ho, Wo), out.shape

    # Reference 1: adaptive-average ('area') semantics in plain JAX.
    a_h = _adaptive_avg_matrix(H, Ho)
    a_w = _adaptive_avg_matrix(W, Wo).T
    ref = jnp.einsum("oh,nchw,wk->ncok", a_h, x, a_w)
    assert jnp.allclose(out, ref, atol=1e-5, rtol=1e-5)

    # Reference 2: for integer upscale factors, 'area' == nearest repeat.
    ref2 = jnp.repeat(jnp.repeat(x, stride, axis=2), stride, axis=3)
    assert jnp.allclose(out, ref2, atol=1e-5, rtol=1e-5)

    print("KERNEL_OK")
</pallas_src>

<mosaic_0001>
module attributes {stable_mosaic.version = 11 : i64} {
  func.func @_area_kernel(%arg0: i32, %arg1: memref<32x16xf32, #tpu.memory_space<vmem>>, %arg2: memref<16x32xf32, #tpu.memory_space<vmem>>, %arg3: memref<8x16x16xf32, #tpu.memory_space<vmem>>, %arg4: memref<8x32x32xf32, #tpu.memory_space<vmem>>) attributes {dimension_semantics = [#tpu.dimension_semantics<parallel>], iteration_bounds = array<i64: 1>, scalar_prefetch = 0 : i64, scratch_operands = 0 : i64, tpu.core_type = #tpu.core_type<tc>, window_params = [{pipeline_mode = #tpu.pipeline_mode<synchronous>, transform_indices = @transform_0, window_bounds = array<i64: 32, 16>}, {pipeline_mode = #tpu.pipeline_mode<synchronous>, transform_indices = @transform_1, window_bounds = array<i64: 16, 32>}, {transform_indices = @transform_2, window_bounds = array<i64: 8, 16, 16>}, {transform_indices = @transform_3, window_bounds = array<i64: 8, 32, 32>}]} {
    %c0 = arith.constant 0 : index
    %c0_0 = arith.constant 0 : index
    %c0_1 = arith.constant 0 : index
    %0 = vector.load %arg3[%c0, %c0_0, %c0_1] : memref<8x16x16xf32, #tpu.memory_space<vmem>>, vector<8x16x16xf32>
    %1 = vector.shape_cast %0 : vector<8x16x16xf32> to vector<128x16xf32>
    %c0_2 = arith.constant 0 : index
    %c0_3 = arith.constant 0 : index
    %2 = vector.load %arg2[%c0_2, %c0_3] : memref<16x32xf32, #tpu.memory_space<vmem>>, vector<16x32xf32>
    %cst = arith.constant dense<0.000000e+00> : vector<128x32xf32>
    %3 = tpu.matmul %1, %2, %cst {dimension_numbers = #tpu.dot_dimension_numbers<[1], [0], [0], [1], [0, 0, 1, 1], [], []>} : vector<128x16xf32>, vector<16x32xf32>, vector<128x32xf32> -> vector<128x32xf32>
    %4 = vector.shape_cast %3 : vector<128x32xf32> to vector<8x16x32xf32>
    %c0_4 = arith.constant 0 : index
    %c0_5 = arith.constant 0 : index
    %5 = vector.load %arg1[%c0_4, %c0_5] : memref<32x16xf32, #tpu.memory_space<vmem>>, vector<32x16xf32>
    %6 = vector.shape_cast %5 : vector<32x16xf32> to vector<1x32x16xf32>
    %7 = vector.broadcast %6 : vector<1x32x16xf32> to vector<8x32x16xf32>
    "tpu.trace_start"() <{level = 10 : i32, message = "boh,bhw->bow"}> : () -> ()
    %cst_6 = arith.constant dense<0.000000e+00> : vector<8x32x32xf32>
    %8 = tpu.matmul %7, %4, %cst_6 {dimension_numbers = #tpu.dot_dimension_numbers<[2], [1], [1], [2], [0, 0, 0, 1, 1, 2], [0], [0]>} : vector<8x32x16xf32>, vector<8x16x32xf32>, vector<8x32x32xf32> -> vector<8x32x32xf32>
    "tpu.trace_stop"() : () -> ()
    %c0_7 = arith.constant 0 : index
    %c0_8 = arith.constant 0 : index
    %c0_9 = arith.constant 0 : index
    %9 = vector.load %arg4[%c0_7, %c0_8, %c0_9] : memref<8x32x32xf32, #tpu.memory_space<vmem>>, vector<8x32x32xf32>
    tpu.vector_store %arg4[%c0_7, %c0_8, %c0_9], %8 {strides = array<i32>} : memref<8x32x32xf32, #tpu.memory_space<vmem>>, vector<8x32x32xf32>,
    return
  }
  func.func @transform_0(%arg0: i32) -> (i32, i32) {
    %c0_i32 = arith.constant 0 : i32
    %c0_i32_0 = arith.constant 0 : i32
    %c0_i32_1 = arith.constant 0 : i32
    return %c0_i32, %c0_i32_0 : i32, i32
  }
  func.func @transform_1(%arg0: i32) -> (i32, i32) {
    %c0_i32 = arith.constant 0 : i32
    %c0_i32_0 = arith.constant 0 : i32
    %c0_i32_1 = arith.constant 0 : i32
    return %c0_i32, %c0_i32_0 : i32, i32
  }
  func.func @transform_2(%arg0: i32) -> (i32, i32, i32) {
    %c0_i32 = arith.constant 0 : i32
    %c0_i32_0 = arith.constant 0 : i32
    %c0_i32_1 = arith.constant 0 : i32
    return %arg0, %c0_i32, %c0_i32_0 : i32, i32, i32
  }
  func.func @transform_3(%arg0: i32) -> (i32, i32, i32) {
    %c0_i32 = arith.constant 0 : i32
    %c0_i32_0 = arith.constant 0 : i32
    %c0_i32_1 = arith.constant 0 : i32
    return %arg0, %c0_i32, %c0_i32_0 : i32, i32, i32
  }
}

</mosaic_0001>

<bundles_post_ra>
// kernel: area_forward.1
= control target key start
LH: loop header
LB: loop body
LE: loop exit
PB: predicated region body
PF: predicated region fallthrough
CT: control target
= control target key end

     0   :  { %8 = vsyncpa [#allocation3], 0  ;;  %s1566_s0 = inlined_call_operand.hbm [shape: f32[32,16], index: 0, kind: input, shape index: {}]   ;;  %s1567_s1 = inlined_call_operand.hbm [shape: f32[16,32], index: 1, kind: input, shape index: {}]   ;;  %s1568_s2 = inlined_call_operand.hbm [shape: f32[8,16,16], index: 2, kind: input, shape index: {}]   ;;  %s1569_s3 = inlined_call_operand.hbm [shape: f32[8,32,32], index: 3, kind: output, shape index: {}]  }
   0x1   :  { %9 = vsyncpa [#allocation6], 0 }
   0x2   :  { %10 = vsyncpa [#allocation4], 0  ;;  %s1373_s12 = smov [#allocation5]   ;;  %s1374_s14 = smov [#allocation2]  }
   0x3   :  { %s28_s13 = sshll.u32 %s1373_s12, 4  ;;  %s16_s15 = sshll.u32 %s1374_s14, 4  ;;  %s29_s13 = int_to_ptr.vmem [resolvable:$true] %s28_s13  ;;  %s1399_s15 = int_to_ptr.vmem [resolvable:$true] %s16_s15 }
   0x4   :  { %s1279_s18 = scalar_lea.hbm %s1567_s1, 256 }
   0x5   :  { %p1280_p0 = scmp.ne.s32.totalorder %s1567_s1, %s1279_s18  ;;  %p1283_p1 = scmp.lt.u32.totalorder %s1279_s18, %s1567_s1 }
   0x7   :  { %p1285_p2 = pnand %p1283_p1, %p1280_p0 }
   0x9   :  { %1288 = shalt.err (!%p1285_p2)
}
   0xa   :  { %s1289_s23 = scalar_lea.vmem %s29_s13, 256  ;;  %p1294_p4 = scmp.lt.s32.totalorder %s29_s13, %s29_s13 }
   0xb   :  { %p1290_p3 = scmp.ne.s32.totalorder %s29_s13, %s1289_s23  ;;  %p1295_p5 = scmp.lt.s32.totalorder %s1289_s23, %s1289_s23 }
   0xd   :  { %p1296_p6 = por %p1295_p5, %p1294_p4 }
   0xf   :  { %p1297_p7 = pnand %p1296_p6, %p1290_p3 }
  0x11   :  { %1300 = shalt.err (!%p1297_p7)
}
  0x12   :  { %s1375_s24 = smov 128   ;;  %s1376_s25 = smov 8  }
  0x13   :  { %34 = dma.hbm_to_vmem [thread:$0]  %s1567_s1, 256, %s29_s13, [#allocation6], %s1375_s24, %s1375_s24, %s1376_s25  }
  0x14   :  { %s1301_s30 = scalar_lea.hbm %s1566_s0, 512 }
  0x15   :  { %p1302_p8 = scmp.ne.s32.totalorder %s1566_s0, %s1301_s30  ;;  %p1305_p9 = scmp.lt.u32.totalorder %s1301_s30, %s1566_s0 }
  0x17   :  { %p1307_p10 = pnand %p1305_p9, %p1302_p8 }
  0x19   :  { %1310 = shalt.err (!%p1307_p10)
}
  0x1a   :  { %s1311_s8 = scalar_lea.vmem %s1399_s15, 512  ;;  %p1316_p12 = scmp.lt.s32.totalorder %s1399_s15, %s1399_s15 }
  0x1b   :  { %p1312_p11 = scmp.ne.s32.totalorder %s1399_s15, %s1311_s8  ;;  %p1317_p13 = scmp.lt.s32.totalorder %s1311_s8, %s1311_s8 }
  0x1d   :  { %p1318_p0 = por %p1317_p13, %p1316_p12 }
  0x1f   :  { %p1319_p1 = pnand %p1318_p0, %p1312_p11 }
  0x21   :  { %1322 = shalt.err (!%p1319_p1)
}
  0x22   :  { %22 = dma.hbm_to_vmem [thread:$0]  %s1566_s0, 512, %s1399_s15, [#allocation3], %s1375_s24, %s1375_s24, %s1376_s25  }
  0x23   :  { %s1377_s10 = smov [#allocation7]   ;;  %s1323_s14 = scalar_lea.hbm %s1568_s2, 2048 }
  0x24   :  { %s40_s11 = sshll.u32 %s1377_s10, 4  ;;  %p1324_p2 = scmp.ne.s32.totalorder %s1568_s2, %s1323_s14  ;;  %s41_s11 = int_to_ptr.vmem [resolvable:$true] %s40_s11 }
  0x25   :  { %p1327_p3 = scmp.lt.u32.totalorder %s1323_s14, %s1568_s2 }
  0x27   :  { %p1329_p4 = pnand %p1327_p3, %p1324_p2 }
  0x29   :  { %1332 = shalt.err (!%p1329_p4)
}
  0x2a   :  { %s1333_s20 = scalar_lea.vmem %s41_s11, 2048  ;;  %p1338_p6 = scmp.lt.s32.totalorder %s41_s11, %s41_s11 }
  0x2b   :  { %p1334_p5 = scmp.ne.s32.totalorder %s41_s11, %s1333_s20  ;;  %p1339_p7 = scmp.lt.s32.totalorder %s1333_s20, %s1333_s20 }
  0x2d   :  { %p1340_p8 = por %p1339_p7, %p1338_p6 }
  0x2f   :  { %p1341_p9 = pnand %p1340_p8, %p1334_p5 }
  0x31   :  { %1344 = shalt.err (!%p1341_p9)
}
  0x32   :  { %46 = dma.hbm_to_vmem [thread:$0]  %s1568_s2, 2048, %s41_s11, [#allocation6], %s1375_s24, %s1375_s24, %s1376_s25  }
  0x33   :  { %1367 = dma.done.wait [#allocation3], 512  }
  0x34   :  { %1368 = vsyncadd [#allocation3], 4294966784 }
  0x35   :  { %1369 = dma.done.wait [#allocation6], 2304  }
  0x36   :  { %1370 = vsyncadd [#allocation6], 4294964992  ;;  %vm74_vm0 = vcmask 130048   ;;  %v72_v0 = vld [vmem:[#allocation5] sm:$0xff]  ;;  %v73_v1 = vld [vmem:[#allocation5 + $0x8] sm:$0xff]  ;;  %vm964_vm1 = vcmask 261120  }
  0x37   :  { %v56_v2 = vld [vmem:[#allocation7] sm:$0xff]  ;;  %v1237_v3 = vpack.c.bf16 %v73_v1, %v72_v0  ;;  %v57_v4 = vld [vmem:[#allocation7 + $0x8] sm:$0xff]  ;;  %v58_v5 = vld [vmem:[#allocation7 + $0x10] sm:$0xff]  ;;  %s1378_s2 = smov [#allocation8]  }
  0x38   :  { %1133 = vmatprep.mubr.msk.f32.mxu0 %vm74_vm0, %v56_v2  ;;  %v59_v6 = vld [vmem:[#allocation7 + $0x18] sm:$0xff]  ;;  %v60_v7 = vld [vmem:[#allocation7 + $0x20] sm:$0xff]  ;;  %v61_v8 = vld [vmem:[#allocation7 + $0x28] sm:$0xff]  ;;  %s1002_s21 = sshll.u32 %s1378_s2, 4  ;;  %s1003_s21 = int_to_ptr.vmem [resolvable:$true] %s1002_s21 }
  0x39   :  { %1238 = vmatprep.subr.bf16.mxu0 %v1237_v3  ;;  %v62_v9 = vld [vmem:[#allocation7 + $0x30] sm:$0xff]  ;;  %v63_v10 = vld [vmem:[#allocation7 + $0x38] sm:$0xff]  ;;  %v64_v11 = vld [vmem:[#allocation7 + $0x40] sm:$0xff]  ;;  %s1345_s22 = scalar_lea.vmem %s1003_s21, 4096  ;;  %p1350_p11 = scmp.lt.s32.totalorder %s1003_s21, %s1003_s21 }
  0x3a   :  { %1240 = vmatpush3.bf16.msra.mxu0 %v1237_v3  ;;  %v65_v12 = vld [vmem:[#allocation7 + $0x48] sm:$0xff]  ;;  %v66_v13 = vld [vmem:[#allocation7 + $0x50] sm:$0xff]  ;;  %v67_v14 = vld [vmem:[#allocation7 + $0x58] sm:$0xff]  ;;  %p1346_p10 = scmp.ne.s32.totalorder %s1003_s21, %s1345_s22  ;;  %p1351_p12 = scmp.lt.s32.totalorder %s1345_s22, %s1345_s22 }
  0x3b   :  { %v68_v15 = vld [vmem:[#allocation7 + $0x60] sm:$0xff]  ;;  %v69_v16 = vld [vmem:[#allocation7 + $0x68] sm:$0xff]  ;;  %v70_v17 = vld [vmem:[#allocation7 + $0x70] sm:$0xff] }
  0x3c   :  { %v71_v18 = vld [vmem:[#allocation7 + $0x78] sm:$0xff]  ;;  %v1467_v19 = vld [vmem:[#allocation2] sm:$0xff]  ;;  %v270_v27 = vld [vmem:[#allocation2 + $0x10] sm:$0xff]  ;;  %p1352_p13 = por %p1351_p12, %p1350_p11 }
  0x3d   :  { %1134 = vmatmul.mubr.msk.f32.vlgmr.msra.gmra.mrb[0].mxu0 %vm74_vm0, %v57_v4  ;;  %1161 = vmatprep.mubr.msk.f32.mxu1 %vm74_vm0, %v1467_v19  ;;  %v1473_v25 = vld [vmem:[#allocation2 + $0x8] sm:$0xff]  ;;  %v271_v30 = vld [vmem:[#allocation2 + $0x18] sm:$0xff] }
  0x3e   :  { %1136 = vmatprep.mubr.msk.f32.mxu0 %vm74_vm0, %v58_v5  ;;  %p1353_p0 = pnand %p1352_p13, %p1346_p10 }
  0x41   :  { %1137 = vmatmul.mubr.msk.f32.gmra.mrb[2].mxu0 %vm74_vm0, %v59_v6 }
  0x42   :  { %1139 = vmatprep.mubr.msk.f32.mxu0 %vm74_vm0, %v60_v7 }
  0x45   :  { %1140 = vmatmul.mubr.msk.f32.gmra.mrb[4].mxu0 %vm74_vm0, %v61_v8 }
  0x46   :  { %1142 = vmatprep.mubr.msk.f32.mxu0 %vm74_vm0, %v62_v9 }
  0x49   :  { %1143 = vmatmul.mubr.msk.f32.gmra.mrb[6].mxu0 %vm74_vm0, %v63_v10 }
  0x4a   :  { %1145 = vmatprep.mubr.msk.f32.mxu0 %vm74_vm0, %v64_v11 }
  0x4d   :  { %1146 = vmatmul.mubr.msk.f32.gmra.mrb[8].mxu0 %vm74_vm0, %v65_v12 }
  0x4e   :  { %1148 = vmatprep.mubr.msk.f32.mxu0 %vm74_vm0, %v66_v13 }
  0x51   :  { %1149 = vmatmul.mubr.msk.f32.gmra.mrb[10].mxu0 %vm74_vm0, %v67_v14 }
  0x52   :  { %1151 = vmatprep.mubr.msk.f32.mxu0 %vm74_vm0, %v68_v15 }
  0x55   :  { %1152 = vmatmul.mubr.msk.f32.gmra.mrb[12].mxu0 %vm74_vm0, %v69_v16 }
  0x56   :  { %1154 = vmatprep.mubr.msk.f32.mxu0 %vm74_vm0, %v70_v17 }
  0x59   :  { %1155 = vmatmul.mubr.msk.f32.gmra.mrb[14].mxu0 %vm74_vm0, %v71_v18 }
  0x5a   :  { %1201 = vmatprep.mubr.msk.f32.mxu0 %vm74_vm0, %v1467_v19 }
 0x110   :  { %v1135_v20 = vpop.f32.mrb[0].mxu0 }
 0x111   :  { %v189_v21 = vpop.f32.mrb[1].mxu0 }
 0x112   :  { %v1241_v22 = vpack.c.bf16 %v1135_v20, %v189_v21 }
 0x114   :  { %v1138_v23 = vpop.f32.mrb[2].mxu0  ;;  %1242 = vmatprep.subr.bf16.mxu1 %v1241_v22 }
 0x115   :  { %v199_v24 = vpop.f32.mrb[3].mxu0  ;;  %1244 = vmatpush3.bf16.msra.mxu1 %v1241_v22 }
 0x116   :  { %v1245_v26 = vpack.c.bf16 %v1138_v23, %v199_v24 }
 0x118   :  { %v1141_v28 = vpop.f32.mrb[4].mxu0  ;;  %1162 = vmatmul.mubr.msk.f32.vlgmr.msra.gmra.mrb[0].mxu1 %vm74_vm0, %v1473_v25  ;;  %1246 = vmatprep.subr.bf16.mxu1 %v1245_v26 }
 0x119   :  { %v209_v29 = vpop.f32.mrb[5].mxu0  ;;  %1248 = vmatpush3.bf16.msra.mxu1 %v1245_v26  ;;  %1164 = vmatprep.mubr.msk.f32.mxu1 %vm74_vm0, %v270_v27 }
 0x11a   :  { %v1249_v31 = vpack.c.bf16 %v1141_v28, %v209_v29 }
 0x11c   :  { %v1144_v32 = vpop.f32.mrb[6].mxu0  ;;  %1165 = vmatmul.mubr.msk.f32.gmra.mrb[2].mxu1 %vm74_vm0, %v271_v30  ;;  %1250 = vmatprep.subr.bf16.mxu1 %v1249_v31 }
 0x11d   :  { %v219_v33 = vpop.f32.mrb[7].mxu0  ;;  %1171 = vmatprep.mubr.msk.f32.mxu1 %vm74_vm0, %v1467_v19 }
 0x11e   :  { %v1253_v34 = vpack.c.bf16 %v1144_v32, %v219_v33 }
 0x120   :  { %v1147_v35 = vpop.f32.mrb[8].mxu0  ;;  %1172 = vmatmul.mubr.msk.f32.vlgmr.msra.gmra.mrb[4].mxu1 %vm74_vm0, %v1473_v25 }
 0x121   :  { %1252 = vmatpush3.bf16.msra.mxu1 %v1249_v31  ;;  %v229_v36 = vpop.f32.mrb[9].mxu0  ;;  %1174 = vmatprep.mubr.msk.f32.mxu1 %vm74_vm0, %v270_v27 }
 0x122   :  { %v1257_v37 = vpack.c.bf16 %v1147_v35, %v229_v36  ;;  %1254 = vmatprep.subr.bf16.mxu1 %v1253_v34 }
 0x124   :  { %1175 = vmatmul.mubr.msk.f32.gmra.mrb[6].mxu1 %vm74_vm0, %v271_v30  ;;  %1258 = vmatprep.subr.bf16.mxu0 %v1257_v37  ;;  %v1150_v38 = vpop.f32.mrb[10].mxu0 }
 0x125   :  { %1260 = vmatpush3.bf16.msra.mxu0 %v1257_v37  ;;  %1181 = vmatprep.mubr.msk.f32.mxu1 %vm74_vm0, %v1467_v19  ;;  %v239_v39 = vpop.f32.mrb[11].mxu0 }
 0x126   :  { %v1261_v40 = vpack.c.bf16 %v1150_v38, %v239_v39 }
 0x128   :  { %1182 = vmatmul.mubr.msk.f32.vlgmr.msra.gmra.mrb[8].mxu1 %vm74_vm0, %v1473_v25  ;;  %v1153_v41 = vpop.f32.mrb[12].mxu0  ;;  %1202 = vmatmul.mubr.msk.f32.vlgmr.msra.gmra.mrb[16].mxu0 %vm74_vm0, %v1473_v25 }
 0x129   :  { %1256 = vmatpush3.bf16.msra.mxu1 %v1253_v34  ;;  %1184 = vmatprep.mubr.msk.f32.mxu1 %vm74_vm0, %v270_v27  ;;  %v249_v42 = vpop.f32.mrb[13].mxu0 }
 0x12a   :  { %1262 = vmatprep.subr.bf16.mxu1 %v1261_v40  ;;  %v1265_v43 = vpack.c.bf16 %v1153_v41, %v249_v42  ;;  %1204 = vmatprep.mubr.msk.f32.mxu0 %vm74_vm0, %v270_v27 }
 0x12c   :  { %1185 = vmatmul.mubr.msk.f32.gmra.mrb[10].mxu1 %vm74_vm0, %v271_v30  ;;  %v1156_v44 = vpop.f32.mrb[14].mxu0  ;;  %1266 = vmatprep.subr.bf16.mxu0 %v1265_v43 }
 0x12d   :  { %1191 = vmatprep.mubr.msk.f32.mxu1 %vm74_vm0, %v1467_v19  ;;  %v259_v45 = vpop.f32.mrb[15].mxu0  ;;  %1268 = vmatpush3.bf16.msra.mxu0 %v1265_v43 }
 0x12e   :  { %v1269_v46 = vpack.c.bf16 %v1156_v44, %v259_v45  ;;  %1205 = vmatmul.mubr.msk.f32.gmra.mrb[18].mxu0 %vm74_vm0, %v271_v30 }
 0x12f   :  { %1221 = vmatprep.mubr.msk.f32.mxu0 %vm74_vm0, %v1467_v19 }
 0x130   :  { %1192 = vmatmul.mubr.msk.f32.vlgmr.msra.gmra.mrb[12].mxu1 %vm74_vm0, %v1473_v25 }
 0x131   :  { %1264 = vmatpush3.bf16.msra.mxu1 %v1261_v40  ;;  %1194 = vmatprep.mubr.msk.f32.mxu1 %vm74_vm0, %v270_v27 }
 0x132   :  { %1270 = vmatprep.subr.bf16.mxu1 %v1269_v46  ;;  %1222 = vmatmul.mubr.msk.f32.vlgmr.msra.gmra.mrb[20].mxu0 %vm74_vm0, %v1473_v25 }
 0x133   :  { %1224 = vmatprep.mubr.msk.f32.mxu0 %vm74_vm0, %v270_v27 }
 0x134   :  { %1195 = vmatmul.mubr.msk.f32.gmra.mrb[14].mxu1 %vm74_vm0, %v271_v30 }
 0x135   :  { %1211 = vmatprep.mubr.msk.f32.mxu1 %vm74_vm0, %v1467_v19 }
 0x136   :  { %1225 = vmatmul.mubr.msk.f32.gmra.mrb[22].mxu0 %vm74_vm0, %v271_v30 }
 0x138   :  { %1212 = vmatmul.mubr.msk.f32.vlgmr.msra.gmra.mrb[16].mxu1 %vm74_vm0, %v1473_v25 }
 0x139   :  { %1272 = vmatpush3.bf16.msra.mxu1 %v1269_v46  ;;  %1214 = vmatprep.mubr.msk.f32.mxu1 %vm74_vm0, %v270_v27 }
 0x13c   :  { %1215 = vmatmul.mubr.msk.f32.gmra.mrb[18].mxu1 %vm74_vm0, %v271_v30 }
 0x13d   :  { %1231 = vmatprep.mubr.msk.f32.mxu1 %vm74_vm0, %v1467_v19 }
 0x140   :  { %1232 = vmatmul.mubr.msk.f32.vlgmr.msra.gmra.mrb[20].mxu1 %vm74_vm0, %v1473_v25 }
 0x141   :  { %1234 = vmatprep.mubr.msk.f32.mxu1 %vm74_vm0, %v270_v27 }
 0x144   :  { %1235 = vmatmul.mubr.msk.f32.gmra.mrb[22].mxu1 %vm74_vm0, %v271_v30 }
 0x1eb   :  { %v1163_v47 = vpop.f32.mrb[0].mxu1 }
 0x1ec   :  { %966 = vst.msk [vmem:[#allocation8 + $0x8] sm:$0xff] %vm964_vm1, %v1163_v47  ;;  %v350_v48 = vpop.f32.mrb[1].mxu1 }
 0x1ed   :  { %965 = vst.msk [vmem:[#allocation8] sm:$0xff] %vm964_vm1, %v350_v48 }
 0x1ef   :  { %v1166_v49 = vpop.f32.mrb[2].mxu1 }
 0x1f0   :  { %968 = vst.msk [vmem:[#allocation8 + $0x18] sm:$0xff] %vm964_vm1, %v1166_v49  ;;  %v360_v50 = vpop.f32.mrb[3].mxu1 }
 0x1f1   :  { %967 = vst.msk [vmem:[#allocation8 + $0x10] sm:$0xff] %vm964_vm1, %v360_v50 }
 0x1f3   :  { %v1173_v51 = vpop.f32.mrb[4].mxu1 }
 0x1f4   :  { %970 = vst.msk [vmem:[#allocation8 + $0x28] sm:$0xff] %vm964_vm1, %v1173_v51  ;;  %v435_v52 = vpop.f32.mrb[5].mxu1 }
 0x1f5   :  { %969 = vst.msk [vmem:[#allocation8 + $0x20] sm:$0xff] %vm964_vm1, %v435_v52 }
 0x1f7   :  { %v1176_v53 = vpop.f32.mrb[6].mxu1 }
 0x1f8   :  { %972 = vst.msk [vmem:[#allocation8 + $0x38] sm:$0xff] %vm964_vm1, %v1176_v53  ;;  %v445_v54 = vpop.f32.mrb[7].mxu1 }
 0x1f9   :  { %971 = vst.msk [vmem:[#allocation8 + $0x30] sm:$0xff] %vm964_vm1, %v445_v54 }
 0x1fb   :  { %v1183_v55 = vpop.f32.mrb[8].mxu1  ;;  %v1203_v56 = vpop.f32.mrb[16].mxu0 }
 0x1fc   :  { %974 = vst.msk [vmem:[#allocation8 + $0x48] sm:$0xff] %vm964_vm1, %v1183_v55  ;;  %v520_v57 = vpop.f32.mrb[9].mxu1  ;;  %982 = vst.msk [vmem:[#allocation8 + $0x88] sm:$0xff] %vm964_vm1, %v1203_v56  ;;  %v690_v58 = vpop.f32.mrb[17].mxu0 }
 0x1fd   :  { %973 = vst.msk [vmem:[#allocation8 + $0x40] sm:$0xff] %vm964_vm1, %v520_v57  ;;  %981 = vst.msk [vmem:[#allocation8 + $0x80] sm:$0xff] %vm964_vm1, %v690_v58 }
 0x1ff   :  { %v1186_v59 = vpop.f32.mrb[10].mxu1 }
 0x200   :  { %976 = vst.msk [vmem:[#allocation8 + $0x58] sm:$0xff] %vm964_vm1, %v1186_v59  ;;  %v530_v60 = vpop.f32.mrb[11].mxu1 }
 0x201   :  { %975 = vst.msk [vmem:[#allocation8 + $0x50] sm:$0xff] %vm964_vm1, %v530_v60  ;;  %v1206_v61 = vpop.f32.mrb[18].mxu0 }
 0x202   :  { %984 = vst.msk [vmem:[#allocation8 + $0x98] sm:$0xff] %vm964_vm1, %v1206_v61  ;;  %v700_v62 = vpop.f32.mrb[19].mxu0 }
 0x203   :  { %v1193_v63 = vpop.f32.mrb[12].mxu1  ;;  %983 = vst.msk [vmem:[#allocation8 + $0x90] sm:$0xff] %vm964_vm1, %v700_v62 }
 0x204   :  { %978 = vst.msk [vmem:[#allocation8 + $0x68] sm:$0xff] %vm964_vm1, %v1193_v63  ;;  %v605_v0 = vpop.f32.mrb[13].mxu1 }
 0x205   :  { %977 = vst.msk [vmem:[#allocation8 + $0x60] sm:$0xff] %vm964_vm1, %v605_v0  ;;  %v1223_v1 = vpop.f32.mrb[20].mxu0 }
 0x206   :  { %990 = vst.msk [vmem:[#allocation8 + $0xc8] sm:$0xff] %vm964_vm1, %v1223_v1  ;;  %v860_v2 = vpop.f32.mrb[21].mxu0 }
 0x207   :  { %v1196_v3 = vpop.f32.mrb[14].mxu1  ;;  %989 = vst.msk [vmem:[#allocation8 + $0xc0] sm:$0xff] %vm964_vm1, %v860_v2 }
 0x208   :  { %980 = vst.msk [vmem:[#allocation8 + $0x78] sm:$0xff] %vm964_vm1, %v1196_v3  ;;  %v615_v4 = vpop.f32.mrb[15].mxu1 }
 0x209   :  { %979 = vst.msk [vmem:[#allocation8 + $0x70] sm:$0xff] %vm964_vm1, %v615_v4  ;;  %v1226_v5 = vpop.f32.mrb[22].mxu0 }
 0x20a   :  { %992 = vst.msk [vmem:[#allocation8 + $0xd8] sm:$0xff] %vm964_vm1, %v1226_v5  ;;  %v870_v6 = vpop.f32.mrb[23].mxu0 }
 0x20b   :  { %v1213_v7 = vpop.f32.mrb[16].mxu1  ;;  %991 = vst.msk [vmem:[#allocation8 + $0xd0] sm:$0xff] %vm964_vm1, %v870_v6 }
 0x20c   :  { %986 = vst.msk [vmem:[#allocation8 + $0xa8] sm:$0xff] %vm964_vm1, %v1213_v7  ;;  %v775_v8 = vpop.f32.mrb[17].mxu1 }
 0x20d   :  { %985 = vst.msk [vmem:[#allocation8 + $0xa0] sm:$0xff] %vm964_vm1, %v775_v8 }
 0x20f   :  { %v1216_v9 = vpop.f32.mrb[18].mxu1 }
 0x210   :  { %988 = vst.msk [vmem:[#allocation8 + $0xb8] sm:$0xff] %vm964_vm1, %v1216_v9  ;;  %v785_v10 = vpop.f32.mrb[19].mxu1 }
 0x211   :  { %987 = vst.msk [vmem:[#allocation8 + $0xb0] sm:$0xff] %vm964_vm1, %v785_v10 }
 0x213   :  { %v1233_v11 = vpop.f32.mrb[20].mxu1 }
 0x214   :  { %994 = vst.msk [vmem:[#allocation8 + $0xe8] sm:$0xff] %vm964_vm1, %v1233_v11  ;;  %v945_v12 = vpop.f32.mrb[21].mxu1 }
 0x215   :  { %993 = vst.msk [vmem:[#allocation8 + $0xe0] sm:$0xff] %vm964_vm1, %v945_v12 }
 0x217   :  { %v1236_v13 = vpop.f32.mrb[22].mxu1 }
 0x218   :  { %996 = vst.msk [vmem:[#allocation8 + $0xf8] sm:$0xff] %vm964_vm1, %v1236_v13  ;;  %v955_v14 = vpop.f32.mrb[23].mxu1 }
 0x219   :  { %995 = vst.msk [vmem:[#allocation8 + $0xf0] sm:$0xff] %vm964_vm1, %v955_v14 }
 0x21a   :  { %1356 = shalt.err (!%p1353_p0)
}
 0x21b   :  { %s1357_s27 = scalar_lea.hbm %s1569_s3, 4096 }
 0x21c   :  { %p1358_p1 = scmp.ne.s32.totalorder %s1569_s3, %s1357_s27  ;;  %p1361_p2 = scmp.lt.u32.totalorder %s1357_s27, %s1569_s3 }
 0x21e   :  { %p1363_p3 = pnand %p1361_p2, %p1358_p1 }
 0x220   :  { %1366 = shalt.err (!%p1363_p3)
}
 0x221   :  { %1008 = dma.vmem_to_hbm [thread:$0]  %s1003_s21, 4096, %s1569_s3, [#allocation4], %s1375_s24, %s1375_s24, %s1376_s25  }
 0x222   :  { %1371 = dma.done.wait [#allocation4], 4096  }
 0x223   :  { %1372 = vsyncadd [#allocation4], 4294963200 }
 0x224   :  { %1012 = vsyncpa [#allocation3], 1 }
 0x225   :  { %1013 = vsyncpa [#allocation6], 1 }
 0x226   :  { %1014 = vsyncpa [#allocation4], 1 }

</bundles_post_ra>
